<compile_context>
chip_gen: v6e
topology: v6e:2x2x1
jax: 0.10.0
libtpu: 0.0.40
codegen_flags: <defaults>
</compile_context>

<pallas_src>
import jax
import jax.numpy as jnp
from jax import lax
from jax.experimental import pallas as pl
from jax.experimental.pallas import tpu as pltpu


def _mlp_kernel(xt_ref, w1_ref, b1_ref, w2_ref, b2_ref, o_ref):
    """Batch-in-lanes MLP tile: out = W2 @ relu(W1 @ Xt + b1) + b2.

    xt : (n_feature, tile_b)   batch on lanes (dense)
    w1 : (n_hidden, n_feature) PyTorch Linear layout (no transpose needed)
    b1 : (n_hidden, 1)
    w2 : (n_output, n_hidden)  PyTorch Linear layout
    b2 : (n_output, 1)
    o  : (n_output, tile_b)    lane-dense output
    """
    xt = xt_ref[...].astype(jnp.bfloat16)
    w1 = w1_ref[...].astype(jnp.bfloat16)
    # (n_hidden, n_feature) @ (n_feature, tile_b) -> (n_hidden, tile_b), f32 acc
    h = lax.dot_general(
        w1, xt,
        dimension_numbers=(((1,), (0,)), ((), ())),
        preferred_element_type=jnp.float32,
    )
    h = jnp.maximum(h + b1_ref[...], 0.0)            # bias + ReLU in f32
    w2 = w2_ref[...].astype(jnp.bfloat16)
    # (n_output, n_hidden) @ (n_hidden, tile_b) -> (n_output, tile_b), f32 acc
    y = lax.dot_general(
        w2, h.astype(jnp.bfloat16),
        dimension_numbers=(((1,), (0,)), ((), ())),
        preferred_element_type=jnp.float32,
    )
    o_ref[...] = (y + b2_ref[...]).astype(o_ref.dtype)


def net_forward(x, w1, b1, w2, b2, *, tile_b=8192):
    """Forward pass of Net: predict(relu(hidden(x))).

    x  : (B, n_feature)        float32
    w1 : (n_hidden, n_feature) float32  (PyTorch Linear layout, NOT transposed)
    b1 : (n_hidden,)           float32
    w2 : (n_output, n_hidden)  float32  (PyTorch Linear layout, NOT transposed)
    b2 : (n_output,)           float32
    returns (B, n_output) float32
    """
    B, n_feature = x.shape
    n_hidden = w1.shape[0]
    n_output = w2.shape[0]

    # Lane axis of a tile must be a multiple of 128.
    tile_b = max(128, ((int(tile_b) + 127) // 128) * 128)

    xt = x.T                                   # (n_feature, B): batch in lanes
    b1c = b1.reshape(n_hidden, 1)
    b2c = b2.reshape(n_output, 1)

    flops = 2 * B * (n_feature * n_hidden + n_hidden * n_output)
    bytes_accessed = 4 * (x.size + w1.size + b1.size + w2.size + b2.size
                          + B * n_output)
    cost = pl.CostEstimate(flops=flops, transcendentals=0,
                           bytes_accessed=bytes_accessed)

    if B <= tile_b:
        # Small batch: single un-pipelined invocation, whole operands in VMEM
        # (footprint is a few MiB at most for B <= 8192 at these widths).
        yt = pl.pallas_call(
            _mlp_kernel,
            out_shape=jax.ShapeDtypeStruct((n_output, B), jnp.float32),
            in_specs=[pl.BlockSpec(memory_space=pltpu.MemorySpace.VMEM)] * 5,
            out_specs=pl.BlockSpec(memory_space=pltpu.MemorySpace.VMEM),
            cost_estimate=cost,
        )(xt, w1, b1c, w2, b2c)
        return yt.T

    # ---- Batch-tiled path (B > tile_b, so the grid has >= 2 steps: both v7x
    # TensorCores get work; harmless on single-TC v5e/v6e). ------------------
    n_tiles = pl.cdiv(B, tile_b)
    b_pad = n_tiles * tile_b
    if b_pad != B:
        # Zero-pad the batch (lane) axis; padded columns are sliced off below.
        xt = jnp.pad(xt, ((0, 0), (0, b_pad - B)))

    # Explicit VMEM budget: double-buffered x/out tiles (sublane-padded to 8)
    # + resident weights + headroom for the (n_hidden, tile_b) intermediates.
    def _pad8(n):
        return ((n + 7) // 8) * 8

    vmem_bytes = (2 * _pad8(n_feature) * tile_b * 4      # xt tiles, 2 buffers
                  + 2 * _pad8(n_output) * tile_b * 4     # out tiles, 2 buffers
                  + 4 * _pad8(n_hidden) * tile_b * 4     # f32/bf16 intermediates
                  + (1 << 20))                           # weights + slack
    vmem_bytes = int(min(max(vmem_bytes, 16 << 20), 48 << 20))

    yt = pl.pallas_call(
        _mlp_kernel,
        out_shape=jax.ShapeDtypeStruct((n_output, b_pad), jnp.float32),
        grid=(n_tiles,),
        in_specs=[
            pl.BlockSpec((n_feature, tile_b), lambda i: (0, i)),     # x tile
            pl.BlockSpec((n_hidden, n_feature), lambda i: (0, 0)),   # w1 resident
            pl.BlockSpec((n_hidden, 1), lambda i: (0, 0)),           # b1 resident
            pl.BlockSpec((n_output, n_hidden), lambda i: (0, 0)),    # w2 resident
            pl.BlockSpec((n_output, 1), lambda i: (0, 0)),           # b2 resident
        ],
        out_specs=pl.BlockSpec((n_output, tile_b), lambda i: (0, i)),
        compiler_params=pltpu.CompilerParams(
            dimension_semantics=("parallel",),
            vmem_limit_bytes=vmem_bytes),
        cost_estimate=cost,
    )(xt, w1, b1c, w2, b2c)
    return yt[:, :B].T


def _ref_forward(x, w1, b1, w2, b2):
    return jnp.maximum(x @ w1.T + b1, 0.0) @ w2.T + b2


if __name__ == "__main__":
    key = jax.random.PRNGKey(0)
    kx, k1, k2, k3, k4 = jax.random.split(key, 5)

    # bf16 MXU operands -> looser tolerance vs. the f32 reference.
    TOL = dict(atol=2e-2, rtol=2e-2)

    # --- Case 1: Net(n_feature=4, n_hidden=32, n_output=1), B=8 --------------
    B, n_feature, n_hidden, n_output = 8, 4, 32, 1
    x = jax.random.normal(kx, (B, n_feature), dtype=jnp.float32)
    w1 = jax.random.normal(k1, (n_hidden, n_feature), dtype=jnp.float32) * 0.1
    b1 = jax.random.normal(k2, (n_hidden,), dtype=jnp.float32) * 0.1
    w2 = jax.random.normal(k3, (n_output, n_hidden), dtype=jnp.float32) * 0.1
    b2 = jax.random.normal(k4, (n_output,), dtype=jnp.float32) * 0.1

    out = net_forward(x, w1, b1, w2, b2)
    jax.block_until_ready(out)
    assert out.shape == (B, n_output)
    assert jnp.allclose(out, _ref_forward(x, w1, b1, w2, b2), **TOL)

    # --- Case 2: n_output > 1 -------------------------------------------------
    n_output2 = 3
    w2b = jax.random.normal(k3, (n_output2, n_hidden), dtype=jnp.float32) * 0.1
    b2b = jax.random.normal(k4, (n_output2,), dtype=jnp.float32) * 0.1
    out2 = net_forward(x, w1, b1, w2b, b2b)
    jax.block_until_ready(out2)
    assert out2.shape == (B, n_output2)
    assert jnp.allclose(out2, _ref_forward(x, w1, b1, w2b, b2b), **TOL)

    # --- Case 3: batch-tiled path with a non-multiple batch (padded grid) ----
    B3 = 300
    x3 = jax.random.normal(kx, (B3, n_feature), dtype=jnp.float32)
    out3 = net_forward(x3, w1, b1, w2, b2, tile_b=128)   # grid=(3,), pad to 384
    jax.block_until_ready(out3)
    assert out3.shape == (B3, n_output)
    assert jnp.allclose(out3, _ref_forward(x3, w1, b1, w2, b2), **TOL)

    print("KERNEL_OK")
</pallas_src>

<mosaic_0001>
module attributes {stable_mosaic.version = 11 : i64} {
  func.func @_mlp_kernel(%arg0: memref<4x8xf32, #tpu.memory_space<vmem>>, %arg1: memref<32x4xf32, #tpu.memory_space<vmem>>, %arg2: memref<32x1xf32, #tpu.memory_space<vmem>>, %arg3: memref<1x32xf32, #tpu.memory_space<vmem>>, %arg4: memref<1x1xf32, #tpu.memory_space<vmem>>, %arg5: memref<1x8xf32, #tpu.memory_space<vmem>>) attributes {dimension_semantics = [], scalar_prefetch = 0 : i64, scratch_operands = 0 : i64, tpu.core_type = #tpu.core_type<tc>} {
    %c0 = arith.constant 0 : index
    %c0_0 = arith.constant 0 : index
    %0 = vector.load %arg0[%c0, %c0_0] : memref<4x8xf32, #tpu.memory_space<vmem>>, vector<4x8xf32>
    %1 = arith.truncf %0 : vector<4x8xf32> to vector<4x8xbf16>
    %c0_1 = arith.constant 0 : index
    %c0_2 = arith.constant 0 : index
    %2 = vector.load %arg1[%c0_1, %c0_2] : memref<32x4xf32, #tpu.memory_space<vmem>>, vector<32x4xf32>
    %3 = arith.truncf %2 : vector<32x4xf32> to vector<32x4xbf16>
    %cst = arith.constant dense<0.000000e+00> : vector<32x8xf32>
    %4 = tpu.matmul %3, %1, %cst {dimension_numbers = #tpu.dot_dimension_numbers<[1], [0], [0], [1], [0, 0, 1, 1], [], []>} : vector<32x4xbf16>, vector<4x8xbf16>, vector<32x8xf32> -> vector<32x8xf32>
    %c0_3 = arith.constant 0 : index
    %c0_4 = arith.constant 0 : index
    %5 = vector.load %arg2[%c0_3, %c0_4] : memref<32x1xf32, #tpu.memory_space<vmem>>, vector<32x1xf32>
    %6 = vector.broadcast %5 : vector<32x1xf32> to vector<32x8xf32>
    %7 = arith.addf %4, %6 : vector<32x8xf32>
    %cst_5 = arith.constant 0.000000e+00 : f32
    %8 = vector.broadcast %cst_5 : f32 to vector<32x8xf32>
    %9 = arith.maximumf %7, %8 : vector<32x8xf32>
    %c0_6 = arith.constant 0 : index
    %c0_7 = arith.constant 0 : index
    %10 = vector.load %arg3[%c0_6, %c0_7] : memref<1x32xf32, #tpu.memory_space<vmem>>, vector<1x32xf32>
    %11 = arith.truncf %10 : vector<1x32xf32> to vector<1x32xbf16>
    %12 = arith.truncf %9 : vector<32x8xf32> to vector<32x8xbf16>
    %cst_8 = arith.constant dense<0.000000e+00> : vector<1x8xf32>
    %13 = tpu.matmul %11, %12, %cst_8 {dimension_numbers = #tpu.dot_dimension_numbers<[1], [0], [0], [1], [0, 0, 1, 1], [], []>} : vector<1x32xbf16>, vector<32x8xbf16>, vector<1x8xf32> -> vector<1x8xf32>
    %c0_9 = arith.constant 0 : index
    %c0_10 = arith.constant 0 : index
    %14 = vector.load %arg4[%c0_9, %c0_10] : memref<1x1xf32, #tpu.memory_space<vmem>>, vector<1x1xf32>
    %15 = vector.broadcast %14 : vector<1x1xf32> to vector<1x8xf32>
    %16 = arith.addf %13, %15 : vector<1x8xf32>
    %c0_11 = arith.constant 0 : index
    %c0_12 = arith.constant 0 : index
    %17 = vector.load %arg5[%c0_11, %c0_12] : memref<1x8xf32, #tpu.memory_space<vmem>>, vector<1x8xf32>
    tpu.vector_store %arg5[%c0_11, %c0_12], %16 {strides = array<i32>} : memref<1x8xf32, #tpu.memory_space<vmem>>, vector<1x8xf32>,
    return
  }
}

</mosaic_0001>

<bundles_post_ra>
// kernel: tpu_custom_call.1
= control target key start
LH: loop header
LB: loop body
LE: loop exit
PB: predicated region body
PF: predicated region fallthrough
CT: control target
= control target key end

     0   :  { %s318_s0 = inlined_call_operand.vmem [shape: f32[4,8], index: 0, kind: input, shape index: {}]   ;;  %s319_s1 = inlined_call_operand.vmem [shape: f32[32,4], index: 1, kind: input, shape index: {}]   ;;  %s320_s2 = inlined_call_operand.vmem [shape: f32[32,1], index: 2, kind: input, shape index: {}]   ;;  %s321_s3 = inlined_call_operand.vmem [shape: f32[1,32], index: 3, kind: input, shape index: {}]   ;;  %s322_s4 = inlined_call_operand.<no memory space> [shape: f32[1,1], index: 4, kind: input, shape index: {}]   ;;  %s323_s5 = inlined_call_operand.hbm [shape: f32[1,8], index: 5, kind: output, shape index: {}]  }
   0x1   :  { %v10_v0 = vstv %s322_s4 }
   0x2   :  { %11 = vst [vmem:[#allocation2] sm:$0x1] %v10_v0 }
   0x3   :  { %v24_v1 = vld [vmem:[%s318_s0] sm:$0xf]  ;;  %vm63_vm0 = vcmask 1041408   ;;  %v27_v3 = vld [vmem:[%s319_s1 + $0x8] sm:$0xff]  ;;  %vm56_vm1 = vcmask 31744   ;;  %v28_v6 = vld [vmem:[%s319_s1 + $0x10] sm:$0xff] }
   0x4   :  { %v26_v2 = vld [vmem:[%s319_s1] sm:$0xff]  ;;  %v25_v4 = vpack.c.bf16 %v24_v1, %v24_v1  ;;  %v29_v7 = vld [vmem:[%s319_s1 + $0x18] sm:$0xff]  ;;  %v34_v8 = vld [vmem:[%s320_s2 + $0x10] sm:$0xff]  ;;  %v246_v9 = vmov 0  }
   0x5   :  { %v30_v5 = vpack.c.bf16 %v27_v3, %v26_v2  ;;  %222 = vset.pattern.permute.xlu0 %v246_v9  ;;  %223 = vset.pattern.permute.xlu1 %v246_v9  ;;  %v32_v10 = vld [vmem:[%s320_s2] sm:$0xff]  ;;  %v31_v12 = vpack.c.bf16 %v29_v7, %v28_v6 }
   0x6   :  { %217 = vmatprep.subr.msk.bf16.mxu0 %vm63_vm0, %v25_v4  ;;  %v65_v11 = vsel %vm63_vm0, %v25_v4, 0 }
   0x7   :  { %205 = vmatprep.mubr.msk.bf16.mxu0 %vm56_vm1, %v30_v5 }
   0x8   :  { %12 = vsyncpa [#allocation4], 0  ;;  %204 = vmatpush3.bf16.msra.mxu0 %v65_v11  ;;  %48 = vperm.xlu0 %222, %v34_v8   ;;  %v35_v13 = vld [vmem:[%s320_s2 + $0x18] sm:$0xff]  ;;  %v33_v14 = vld [vmem:[%s320_s2 + $0x8] sm:$0xff]  ;;  %v247_v16 = vmov 0.0   ;;  %vm248_vm2 = vmmov 0   ;;  %v130_v37 = vlaneseq }
   0x9   :  { %38 = vperm.xlu1 %223, %v32_v10   ;;  %v124_v15 = vld [vmem:[#allocation2] sm:$0x1]  ;;  %209 = vmatprep.subr.bf16.mxu1 %v247_v16  ;;  %vm134_vm3 = vcmask 261120   ;;  %s249_s11 = smov [#allocation3]   ;;  %vm178_vm4 = vcmask 57344  }
   0xa   :  { %213 = vmatprep.mubr.msk.bf16.mxu1 %vm248_vm2, %v247_v16  ;;  %v120_v34 = vld [vmem:[%s321_s3] sm:$0x1]  ;;  %v131_v38 = vshrl.u32 %v130_v37, 7  ;;  %s186_s12 = sshll.u32 %s249_s11, 4  ;;  %s187_s12 = int_to_ptr.vmem [resolvable:$true] %s186_s12 }
   0xb   :  { %206 = vmatmul.mubr.msk.bf16.vlgmr.msra.gmra.mxu0 %vm56_vm1, %v31_v12  ;;  %v121_v36 = vpack.c.bf16 %v120_v34, %v120_v34  ;;  %s224_s3 = scalar_lea.vmem %s187_s12, 16  ;;  %s228_s13 = scalar_lea.vmem %s187_s12, 32 }
   0xc   :  { %53 = vperm.xlu0 %222, %v35_v13   ;;  %v132_v39 = vsub.s32 0, %v131_v38  ;;  %p225_p0 = scmp.ne.s32.totalorder %s187_s12, %s224_s3  ;;  %p229_p1 = scmp.lt.s32.totalorder %s187_s12, %s187_s12 }
   0xd   :  { %43 = vperm.xlu1 %223, %v33_v14   ;;  %p230_p2 = scmp.lt.s32.totalorder %s228_s13, %s224_s3 }
   0xf   :  { %p231_p3 = por %p230_p2, %p229_p1 }
  0x10   :  { %127 = vperm.xlu0 %222, %v124_v15  }
  0x11   :  { %p232_p4 = pnand %p231_p3, %p225_p0 }
  0x83   :  { %v49_v17 = vpop.permute.xlu0 %48 }
  0x84   :  { %v39_v18 = vpop.permute.xlu1 %38 }
  0x87   :  { %v54_v22 = vpop.permute.xlu0 %53 }
  0x88   :  { %v44_v25 = vpop.permute.xlu1 %43 }
  0x8b   :  { %v128_v40 = vpop.permute.xlu0 %127 }
  0x8c   :  { %v133_v41 = vrot.slane %v128_v40, %v132_v39 }
  0xcb   :  { %v207_v19 = vpop.f32.mrf.mxu0 }
  0xcc   :  { %v110_v21 = vadd.f32 %v207_v19, %v49_v17 }
  0xcd   :  { %v101_v20 = vpop.f32.mrf.mxu0 }
  0xce   :  { %v118_v27 = vmax.f32 %v110_v21, 0.0  ;;  %v102_v28 = vadd.f32 %v101_v20, %v39_v18 }
  0xcf   :  { %v208_v23 = vpop.f32.mrf.mxu0 }
  0xd0   :  { %v113_v24 = vadd.f32 %v208_v23, %v54_v22  ;;  %v116_v33 = vmax.f32 %v102_v28, 0.0 }
  0xd1   :  { %v104_v26 = vpop.f32.mrf.mxu0 }
  0xd2   :  { %v119_v29 = vmax.f32 %v113_v24, 0.0  ;;  %v105_v30 = vadd.f32 %v104_v26, %v44_v25 }
  0xd4   :  { %v117_v31 = vmax.f32 %v105_v30, 0.0  ;;  %v123_v32 = vpack.c.bf16 %v119_v29, %v118_v27 }
  0xd6   :  { %210 = vmatpush3.bf16.msra.mxu1 %v123_v32  ;;  %v122_v35 = vpack.c.bf16 %v117_v31, %v116_v33 }
  0xd7   :  { %211 = vmatprep.subr.bf16.mxu1 %v247_v16 }
  0xda   :  { %212 = vmatpush3.bf16.msra.mxu1 %v122_v35 }
  0xdd   :  { %214 = vmatmul.mubr.msk.bf16.vlgmr.msra.gmra.mxu1 %vm134_vm3, %v121_v36 }
 0x19d   :  { %v172_v42 = vpop.f32.mrf.mxu1 }
 0x19e   :  { %v173_v43 = vadd.f32 %v172_v42, %v133_v41 }
 0x19f   :  { %v215_v44 = vpop.f32.mrf.mxu1 }
 0x1a0   :  { %179 = vst.msk [vmem:[#allocation3] sm:$0x1] %vm178_vm4, %v173_v43 }
 0x1a1   :  { %v175_v45 = vpop.f32.mrf.mxu1 }
 0x1a2   :  { %235 = shalt.err (!%p232_p4)
}
 0x1a3   :  { %189 = dma.vmem_to_hbm [thread:$0]  %s187_s12, 16, %s323_s5, [#allocation4]   ;;  %v216_v46 = vpop.f32.mrf.mxu1 }
 0x1a4   :  { %244 = dma.done.wait [#allocation4], 16  }
 0x1a5   :  { %245 = vsyncadd [#allocation4], 4294967280 }
 0x1a6   :  { %193 = vsyncpa [#allocation4], 1 }

</bundles_post_ra>
